<compile_context>
chip_gen: v6e
topology: v6e:2x2x1
jax: 0.10.0
libtpu: 0.0.40
codegen_flags: <defaults>
</compile_context>

<pallas_src>
import math

import jax
import jax.numpy as jnp
from jax.experimental import pallas as pl
from jax.experimental.pallas import tpu as pltpu


def _round_up(x, m):
    return ((x + m - 1) // m) * m


def _make_sap_kernel(t_total, tk):
    """Kernel body factory; static sequence length / T-chunk size baked in."""
    has_t_tail = (t_total % tk) != 0  # last T chunk extends past the array

    def kernel(x_ref, w_ref, o_ref, m_sc, z_sc, acc_sc):
        # x_ref: (bn, tk, H)   w_ref: (1, H)   o_ref: (bn, H)
        # m_sc, z_sc: (bn, 1) f32 scratch   acc_sc: (bn, H) f32 scratch
        t = pl.program_id(1)

        @pl.when(t == 0)
        def _():
            m_sc[...] = jnp.full_like(m_sc, -jnp.inf)
            z_sc[...] = jnp.zeros_like(z_sc)
            acc_sc[...] = jnp.zeros_like(acc_sc)

        x = x_ref[...]
        bn, tkb, h = x.shape

        if has_t_tail:
            # The last T chunk reads past the (unpadded) sequence.  Zero the
            # tail rows so the MXU contractions cannot pick up garbage, and
            # give those positions -inf scores (zero softmax weight).
            valid = jax.lax.broadcasted_iota(jnp.int32, (bn, tkb), 1) < (
                t_total - t * tk)
            x = jnp.where(valid[:, :, None], x, jnp.zeros_like(x))

        # --- score projection Linear(H -> 1) on the MXU --------------------
        # Bias omitted: softmax over T is shift-invariant, so it cancels.
        w_b = jnp.broadcast_to(w_ref[...].reshape(1, 1, h), (bn, 1, h))
        scores = jnp.einsum(
            "bqh,bth->bqt", w_b, x,
            preferred_element_type=jnp.float32)[:, 0, :]           # (bn, tk)
        if has_t_tail:
            scores = jnp.where(valid, scores, -jnp.inf)

        # --- online softmax over the T grid axis (deferred normalization) --
        m_prev = m_sc[...]
        m_new = jnp.maximum(m_prev, jnp.max(scores, axis=-1, keepdims=True))
        alpha = jnp.exp(m_prev - m_new)                            # (bn, 1)
        p = jnp.exp(scores - m_new)                                # (bn, tk)
        p_lo = p.astype(x.dtype)          # same rounding in numerator & denom
        z_sc[...] = alpha * z_sc[...] + jnp.sum(
            p_lo.astype(jnp.float32), axis=-1, keepdims=True)
        acc_sc[...] = alpha * acc_sc[...] + jnp.einsum(
            "bqt,bth->bqh", p_lo[:, None, :], x,
            preferred_element_type=jnp.float32)[:, 0, :]           # (bn, H)
        m_sc[...] = m_new

        @pl.when(t == pl.num_programs(1) - 1)
        def _():
            o_ref[...] = (
                acc_sc[...] * pl.reciprocal(z_sc[...], approx=True)
            ).astype(o_ref.dtype)

    return kernel


def self_attention_pooling(batch_rep, weight, bias=None):
    """SelfAttentionPooling forward.

    batch_rep: (N, T, H); weight: (1, H) from nn.Linear(H, 1); bias: (1, 1)
    (unused: the scalar bias cancels in the softmax).  Returns (N, H).
    """
    del bias  # mathematically a no-op on the pooled output
    N, T, H = batch_rep.shape
    dtype = batch_rep.dtype
    itemsize = jnp.dtype(dtype).itemsize

    # Per-generation VMEM budget: big tiles on 128-MiB parts (v5e/v6e),
    # smaller tiles + lower scoped limit on v7x (64 MiB per TensorCore).
    try:
        vmem_cap = int(pltpu.get_tpu_info().vmem_capacity_bytes)
    except Exception:  # conservative (v7x-sized) fallback
        vmem_cap = 64 << 20
    big_vmem = vmem_cap >= (96 << 20)
    tile_budget = (20 << 20) if big_vmem else (10 << 20)   # one x tile
    vmem_limit = (80 << 20) if big_vmem else (48 << 20)

    # Tile selection.  T and H are never padded (full-dim block dims are
    # exempt from the (8,128) divisibility rule).
    row_bytes = T * H * itemsize
    if 8 * row_bytes <= tile_budget:
        tk = T                                   # whole sequence per block
        bn = (tile_budget // row_bytes) // 8 * 8
    else:
        # Long-sequence path: tile T, online softmax across chunks.
        bn = 8
        tk = max(8, (tile_budget // (8 * H * itemsize)) // 8 * 8)
        tk = min(tk, T)
        # TODO(synk): an H grid axis would be needed for extreme H where even
        # an (8, 8, H) block exceeds the VMEM budget; not implemented.
    bn = min(bn, 256)              # bound the in-kernel batched-matmul loop
    n8 = _round_up(N, 8)
    bn = max(8, min(bn, n8))
    if n8 >= 16:
        # Keep >= 2 batch grid steps so both v7x TensorCores get work
        # (batch axis is marked "parallel").
        bn = min(bn, _round_up((n8 + 1) // 2, 8))
    # Prefer a bn that divides the 8-aligned batch so padding stays <= 7 rows.
    best = None
    for cand in range(bn, 7, -8):
        if n8 % cand == 0:
            best = cand
            break
    if best is not None and 2 * best >= bn:
        bn = best
    n_padded = _round_up(N, bn)
    nt = pl.cdiv(T, tk)

    x = batch_rep
    if n_padded != N:              # batch axis only; T / H are never padded
        x = jnp.pad(x, ((0, n_padded - N), (0, 0), (0, 0)))
    w = weight.reshape(1, H).astype(dtype)

    kernel = _make_sap_kernel(T, tk)

    # TODO(synk): if a bundle dump shows exposed DMA on short grids, try
    # pipeline_mode=pl.Buffered(3) on the x BlockSpec for v5e/v6e only.
    out = pl.pallas_call(
        kernel,
        out_shape=jax.ShapeDtypeStruct((n_padded, H), dtype),
        grid_spec=pltpu.PrefetchScalarGridSpec(
            num_scalar_prefetch=0,
            grid=(n_padded // bn, nt),
            in_specs=[
                pl.BlockSpec((bn, tk, H), lambda b, t: (b, t, 0)),
                pl.BlockSpec((1, H), lambda b, t: (0, 0)),
            ],
            out_specs=pl.BlockSpec((bn, H), lambda b, t: (b, 0)),
            scratch_shapes=[
                pltpu.VMEM((bn, 1), jnp.float32),   # running max  m
                pltpu.VMEM((bn, 1), jnp.float32),   # running denom z
                pltpu.VMEM((bn, H), jnp.float32),   # running numerator
            ],
        ),
        compiler_params=pltpu.CompilerParams(
            dimension_semantics=("parallel", "arbitrary"),
            vmem_limit_bytes=vmem_limit,
        ),
        cost_estimate=pl.CostEstimate(
            flops=4 * n_padded * T * H,
            transcendentals=n_padded * T,
            bytes_accessed=(n_padded * T * H + n_padded * H + H) * itemsize,
        ),
    )(x, w)

    return out[:N]


def _reference(batch_rep, weight, bias):
    # Pure-JAX reference mirroring the PyTorch forward (bias included).
    scores = jnp.einsum("nth,oh->nto", batch_rep, weight)[..., 0] + bias[0, 0]
    att = jax.nn.softmax(scores, axis=1)[..., None]                  # (N, T, 1)
    return jnp.sum(batch_rep * att, axis=1)                          # (N, H)


if __name__ == "__main__":
    N, T, H = 2, 8, 32
    key = jax.random.PRNGKey(0)
    kx, kw, kb = jax.random.split(key, 3)

    batch_rep = jax.random.normal(kx, (N, T, H), dtype=jnp.float32)

    # Deterministic init mimicking nn.Linear(H, 1): U(-1/sqrt(H), 1/sqrt(H)).
    bound = 1.0 / math.sqrt(H)
    weight = jax.random.uniform(kw, (1, H), jnp.float32, -bound, bound)
    bias = jax.random.uniform(kb, (1, 1), jnp.float32, -bound, bound)

    out = self_attention_pooling(batch_rep, weight, bias)
    out = jax.block_until_ready(out)

    ref = _reference(batch_rep, weight, bias)
    assert out.shape == (N, H)
    # 2e-3 tolerance: normalization uses the EUP's approximate reciprocal.
    err = float(jnp.max(jnp.abs(out - ref)))
    assert jnp.allclose(out, ref, atol=2e-3, rtol=2e-3), err

    print("KERNEL_OK")
</pallas_src>

<mosaic_0001>
module attributes {stable_mosaic.version = 11 : i64} {
  func.func @kernel(%arg0: i32, %arg1: i32, %arg2: memref<8x8x32xf32, #tpu.memory_space<vmem>>, %arg3: memref<1x32xf32, #tpu.memory_space<vmem>>, %arg4: memref<8x32xf32, #tpu.memory_space<vmem>>, %arg5: memref<8x1xf32, #tpu.memory_space<vmem>>, %arg6: memref<8x1xf32, #tpu.memory_space<vmem>>, %arg7: memref<8x32xf32, #tpu.memory_space<vmem>>) attributes {dimension_semantics = [#tpu.dimension_semantics<parallel>, #tpu.dimension_semantics<arbitrary>], iteration_bounds = array<i64: 1, 1>, scalar_prefetch = 0 : i64, scratch_operands = 3 : i64, tpu.core_type = #tpu.core_type<tc>, window_params = [{transform_indices = @transform_0, window_bounds = array<i64: 8, 8, 32>}, {pipeline_mode = #tpu.pipeline_mode<synchronous>, transform_indices = @transform_1, window_bounds = array<i64: 1, 32>}, {transform_indices = @transform_2, window_bounds = array<i64: 8, 32>}]} {
    %c0_i32 = arith.constant 0 : i32
    %0 = arith.cmpi eq, %arg1, %c0_i32 : i32
    %1 = arith.extui %0 : i1 to i32
    %c0_i32_0 = arith.constant 0 : i32
    %2 = arith.cmpi ne, %1, %c0_i32_0 : i32
    scf.if %2 {
      %cst_22 = arith.constant 0xFF800000 : f32
      %37 = vector.broadcast %cst_22 : f32 to vector<8x1xf32>
      %c0_23 = arith.constant 0 : index
      %c0_24 = arith.constant 0 : index
      %38 = vector.load %arg5[%c0_23, %c0_24] : memref<8x1xf32, #tpu.memory_space<vmem>>, vector<8x1xf32>
      tpu.vector_store %arg5[%c0_23, %c0_24], %37 {strides = array<i32>} : memref<8x1xf32, #tpu.memory_space<vmem>>, vector<8x1xf32>,
      %cst_25 = arith.constant 0.000000e+00 : f32
      %39 = vector.broadcast %cst_25 : f32 to vector<8x1xf32>
      %c0_26 = arith.constant 0 : index
      %c0_27 = arith.constant 0 : index
      %40 = vector.load %arg6[%c0_26, %c0_27] : memref<8x1xf32, #tpu.memory_space<vmem>>, vector<8x1xf32>
      tpu.vector_store %arg6[%c0_26, %c0_27], %39 {strides = array<i32>} : memref<8x1xf32, #tpu.memory_space<vmem>>, vector<8x1xf32>,
      %cst_28 = arith.constant 0.000000e+00 : f32
      %41 = vector.broadcast %cst_28 : f32 to vector<8x32xf32>
      %c0_29 = arith.constant 0 : index
      %c0_30 = arith.constant 0 : index
      %42 = vector.load %arg7[%c0_29, %c0_30] : memref<8x32xf32, #tpu.memory_space<vmem>>, vector<8x32xf32>
      tpu.vector_store %arg7[%c0_29, %c0_30], %41 {strides = array<i32>} : memref<8x32xf32, #tpu.memory_space<vmem>>, vector<8x32xf32>,
    } else {
    }
    %c0 = arith.constant 0 : index
    %c0_1 = arith.constant 0 : index
    %c0_2 = arith.constant 0 : index
    %3 = vector.load %arg2[%c0, %c0_1, %c0_2] : memref<8x8x32xf32, #tpu.memory_space<vmem>>, vector<8x8x32xf32>
    %c0_3 = arith.constant 0 : index
    %c0_4 = arith.constant 0 : index
    %4 = vector.load %arg3[%c0_3, %c0_4] : memref<1x32xf32, #tpu.memory_space<vmem>>, vector<1x32xf32>
    %5 = vector.shape_cast %4 : vector<1x32xf32> to vector<1x1x32xf32>
    %6 = vector.shape_cast %5 : vector<1x1x32xf32> to vector<1x1x32xf32>
    %7 = vector.broadcast %6 : vector<1x1x32xf32> to vector<8x1x32xf32>
    "tpu.trace_start"() <{level = 10 : i32, message = "bqh,bth->bqt"}> : () -> ()
    %cst = arith.constant dense<0.000000e+00> : vector<8x1x8xf32>
    %8 = tpu.matmul %7, %3, %cst {dimension_numbers = #tpu.dot_dimension_numbers<[2], [2], [1], [1], [0, 0, 0, 1, 1, 1], [0], [0]>} : vector<8x1x32xf32>, vector<8x8x32xf32>, vector<8x1x8xf32> -> vector<8x1x8xf32>
    "tpu.trace_stop"() : () -> ()
    %9 = vector.shape_cast %8 : vector<8x1x8xf32> to vector<8x8xf32>
    %c0_5 = arith.constant 0 : index
    %c0_6 = arith.constant 0 : index
    %10 = vector.load %arg5[%c0_5, %c0_6] : memref<8x1xf32, #tpu.memory_space<vmem>>, vector<8x1xf32>
    %cst_7 = arith.constant dense<0xFF800000> : vector<8xf32>
    %11 = vector.multi_reduction <maximumf>, %9, %cst_7 [1] : vector<8x8xf32> to vector<8xf32>
    %12 = vector.shape_cast %11 : vector<8xf32> to vector<8x1xf32>
    %13 = arith.maximumf %10, %12 : vector<8x1xf32>
    %14 = arith.subf %10, %13 : vector<8x1xf32>
    %15 = math.exp %14 : vector<8x1xf32>
    %16 = vector.broadcast %13 : vector<8x1xf32> to vector<8x8xf32>
    %17 = arith.subf %9, %16 : vector<8x8xf32>
    %18 = math.exp %17 : vector<8x8xf32>
    %c0_8 = arith.constant 0 : index
    %c0_9 = arith.constant 0 : index
    %19 = vector.load %arg6[%c0_8, %c0_9] : memref<8x1xf32, #tpu.memory_space<vmem>>, vector<8x1xf32>
    %20 = arith.mulf %15, %19 : vector<8x1xf32>
    %cst_10 = arith.constant dense<0.000000e+00> : vector<8xf32>
    %21 = vector.multi_reduction <add>, %18, %cst_10 [1] : vector<8x8xf32> to vector<8xf32>
    %22 = vector.shape_cast %21 : vector<8xf32> to vector<8x1xf32>
    %23 = arith.addf %20, %22 : vector<8x1xf32>
    %c0_11 = arith.constant 0 : index
    %c0_12 = arith.constant 0 : index
    %24 = vector.load %arg6[%c0_11, %c0_12] : memref<8x1xf32, #tpu.memory_space<vmem>>, vector<8x1xf32>
    tpu.vector_store %arg6[%c0_11, %c0_12], %23 {strides = array<i32>} : memref<8x1xf32, #tpu.memory_space<vmem>>, vector<8x1xf32>,
    %c0_13 = arith.constant 0 : index
    %c0_14 = arith.constant 0 : index
    %25 = vector.load %arg7[%c0_13, %c0_14] : memref<8x32xf32, #tpu.memory_space<vmem>>, vector<8x32xf32>
    %26 = vector.broadcast %15 : vector<8x1xf32> to vector<8x32xf32>
    %27 = arith.mulf %26, %25 : vector<8x32xf32>
    %28 = vector.shape_cast %18 : vector<8x8xf32> to vector<8x1x8xf32>
    "tpu.trace_start"() <{level = 10 : i32, message = "bqt,bth->bqh"}> : () -> ()
    %cst_15 = arith.constant dense<0.000000e+00> : vector<8x1x32xf32>
    %29 = tpu.matmul %28, %3, %cst_15 {dimension_numbers = #tpu.dot_dimension_numbers<[2], [1], [1], [2], [0, 0, 0, 1, 1, 2], [0], [0]>} : vector<8x1x8xf32>, vector<8x8x32xf32>, vector<8x1x32xf32> -> vector<8x1x32xf32>
    "tpu.trace_stop"() : () -> ()
    %30 = vector.shape_cast %29 : vector<8x1x32xf32> to vector<8x32xf32>
    %31 = arith.addf %27, %30 : vector<8x32xf32>
    %c0_16 = arith.constant 0 : index
    %c0_17 = arith.constant 0 : index
    %32 = vector.load %arg7[%c0_16, %c0_17] : memref<8x32xf32, #tpu.memory_space<vmem>>, vector<8x32xf32>
    tpu.vector_store %arg7[%c0_16, %c0_17], %31 {strides = array<i32>} : memref<8x32xf32, #tpu.memory_space<vmem>>, vector<8x32xf32>,
    %c0_18 = arith.constant 0 : index
    %c0_19 = arith.constant 0 : index
    %33 = vector.load %arg5[%c0_18, %c0_19] : memref<8x1xf32, #tpu.memory_space<vmem>>, vector<8x1xf32>
    tpu.vector_store %arg5[%c0_18, %c0_19], %13 {strides = array<i32>} : memref<8x1xf32, #tpu.memory_space<vmem>>, vector<8x1xf32>,
    %c0_i32_20 = arith.constant 0 : i32
    %34 = arith.cmpi eq, %arg1, %c0_i32_20 : i32
    %35 = arith.extui %34 : i1 to i32
    %c0_i32_21 = arith.constant 0 : i32
    %36 = arith.cmpi ne, %35, %c0_i32_21 : i32
    scf.if %36 {
      %c0_22 = arith.constant 0 : index
      %c0_23 = arith.constant 0 : index
      %37 = vector.load %arg7[%c0_22, %c0_23] : memref<8x32xf32, #tpu.memory_space<vmem>>, vector<8x32xf32>
      %c0_24 = arith.constant 0 : index
      %c0_25 = arith.constant 0 : index
      %38 = vector.load %arg6[%c0_24, %c0_25] : memref<8x1xf32, #tpu.memory_space<vmem>>, vector<8x1xf32>
      %39 = tpu.reciprocal %38 {approx = true} : vector<8x1xf32> -> vector<8x1xf32>
      %40 = vector.broadcast %39 : vector<8x1xf32> to vector<8x32xf32>
      %41 = arith.mulf %37, %40 : vector<8x32xf32>
      %c0_26 = arith.constant 0 : index
      %c0_27 = arith.constant 0 : index
      %42 = vector.load %arg4[%c0_26, %c0_27] : memref<8x32xf32, #tpu.memory_space<vmem>>, vector<8x32xf32>
      tpu.vector_store %arg4[%c0_26, %c0_27], %41 {strides = array<i32>} : memref<8x32xf32, #tpu.memory_space<vmem>>, vector<8x32xf32>,
    } else {
    }
    return
  }
  func.func @transform_0(%arg0: i32, %arg1: i32) -> (i32, i32, i32) {
    %c0_i32 = arith.constant 0 : i32
    %c0_i32_0 = arith.constant 0 : i32
    return %arg0, %arg1, %c0_i32 : i32, i32, i32
  }
  func.func @transform_1(%arg0: i32, %arg1: i32) -> (i32, i32) {
    %c0_i32 = arith.constant 0 : i32
    %c0_i32_0 = arith.constant 0 : i32
    %c0_i32_1 = arith.constant 0 : i32
    return %c0_i32, %c0_i32_0 : i32, i32
  }
  func.func @transform_2(%arg0: i32, %arg1: i32) -> (i32, i32) {
    %c0_i32 = arith.constant 0 : i32
    %c0_i32_0 = arith.constant 0 : i32
    return %arg0, %c0_i32 : i32, i32
  }
}

</mosaic_0001>

<bundles_post_ra>
// kernel: tpu_custom_call.1
= control target key start
LH: loop header
LB: loop body
LE: loop exit
PB: predicated region body
PF: predicated region fallthrough
CT: control target
= control target key end

     0   :  { %7 = vsyncpa [#allocation6], 0  ;;  %s1768_s0 = inlined_call_operand.hbm [shape: f32[8,8,32], index: 0, kind: input, shape index: {}]   ;;  %s1769_s1 = inlined_call_operand.vmem [shape: f32[1,32], index: 1, kind: input, shape index: {}]   ;;  %s1770_s2 = inlined_call_operand.hbm [shape: f32[8,32], index: 2, kind: output, shape index: {}]  }
   0x1   :  { %8 = vsyncpa [#allocation7], 0  ;;  %s1592_s9 = smov [#allocation5]  }
   0x2   :  { %s14_s10 = sshll.u32 %s1592_s9, 4  ;;  %s15_s10 = int_to_ptr.vmem [resolvable:$true] %s14_s10 }
   0x3   :  { %s1556_s11 = scalar_lea.vmem %s15_s10, 1024  ;;  %p1561_p1 = scmp.lt.s32.totalorder %s15_s10, %s15_s10 }
   0x4   :  { %p1557_p0 = scmp.ne.s32.totalorder %s15_s10, %s1556_s11  ;;  %p1562_p2 = scmp.lt.s32.totalorder %s1556_s11, %s1556_s11 }
   0x6   :  { %p1563_p3 = por %p1562_p2, %p1561_p1 }
   0x8   :  { %p1564_p4 = pnand %p1563_p3, %p1557_p0 }
   0xa   :  { %1567 = shalt.err (!%p1564_p4)
}
   0xb   :  { %s1593_s12 = smov 128   ;;  %s1594_s13 = smov 8  }
   0xc   :  { %20 = dma.hbm_to_vmem [thread:$0]  %s1768_s0, 1024, %s15_s10, [#allocation6], %s1593_s12, %s1593_s12, %s1594_s13  }
   0xd   :  { %1588 = dma.done.wait [#allocation6], 1024  }
   0xe   :  { %1589 = vsyncadd [#allocation6], 4294966272  ;;  %vm33_vm0 = vcmask 261120   ;;  %v1595_v0 = vmov 0.0   ;;  %vm1596_vm1 = vmmov 0   ;;  %v35_v1 = vld [vmem:[#allocation5] sm:$0xff] }
   0xf   :  { %1438 = vmatprep.subr.mxu0 %v1595_v0  ;;  %1443 = vmatprep.subr.mxu1 %v1595_v0  ;;  %34 = vst.msk [vmem:[#allocation4] sm:$0xff] %vm33_vm0, %v1595_v0  ;;  %v36_v2 = vld [vmem:[#allocation5 + $0x8] sm:$0xff]  ;;  %v1633_v4 = vld [vmem:[#allocation5 + $0x10] sm:$0xff]  ;;  %v1635_v5 = vld [vmem:[#allocation5 + $0x18] sm:$0xff]  ;;  %vm30_vm2 = vcmask 7168   ;;  %v1597_v10 = vmov -inf  }
  0x10   :  { %1440 = vmatprep.mubr.msk.f32.mxu0 %vm1596_vm1, %v1595_v0  ;;  %1445 = vmatprep.mubr.msk.f32.mxu1 %vm1596_vm1, %v1595_v0  ;;  %v43_v3 = vld [vmem:[%s1769_s1] sm:$0x1]  ;;  %v1647_v6 = vld [vmem:[#allocation5 + $0x20] sm:$0xff]  ;;  %v1663_v8 = vld [vmem:[#allocation5 + $0x30] sm:$0xff]  ;;  %31 = vst.msk [vmem:[#allocation2] sm:$0xff] %vm30_vm2, %v1597_v10  ;;  %vm642_vm3 = vcmask 1041409  }
  0x11   :  { %1439 = vmatpush3.xpose.msk.msra.mxu0 %vm33_vm0, %v35_v1  ;;  %1444 = vmatpush3.xpose.msk.msra.mxu1 %vm33_vm0, %v36_v2  ;;  %v1649_v7 = vld [vmem:[#allocation5 + $0x28] sm:$0xff]  ;;  %v1665_v9 = vld [vmem:[#allocation5 + $0x38] sm:$0xff]  ;;  %32 = vst.msk [vmem:[#allocation3] sm:$0xff] %vm30_vm2, %v1595_v0  ;;  %vm645_vm4 = vcmask 1042434   ;;  %vm648_vm5 = vcmask 1043459   ;;  %vm651_vm6 = vcmask 1044484  }
  0x12   :  { %1448 = vmatprep.subr.mxu0 %v1595_v0  ;;  %1453 = vmatprep.subr.mxu1 %v1595_v0  ;;  %vm654_vm7 = vcmask 1045509   ;;  %vm657_vm8 = vcmask 1046534   ;;  %vm660_vm9 = vcmask 1047559   ;;  %vm663_vm10 = vcmask 64512   ;;  %s1599_s1 = smov [#allocation8]  }
  0x13   :  { %v1598_v42 = vmov 0   ;;  %s1373_s17 = sshll.u32 %s1599_s1, 4  ;;  %s1374_s17 = int_to_ptr.vmem [resolvable:$true] %s1373_s17 }
  0x14   :  { %1441 = vmatmul.mubr.msk.f32.vlgmr.msra.gmra.mxu0 %vm33_vm0, %v43_v3  ;;  %1446 = vmatmul.mubr.msk.f32.vlgmr.msra.gmra.mxu1 %vm33_vm0, %v43_v3  ;;  %s1568_s18 = scalar_lea.vmem %s1374_s17, 128  ;;  %p1573_p6 = scmp.lt.s32.totalorder %s1374_s17, %s1374_s17 }
  0x15   :  { %1449 = vmatpush3.xpose.msk.msra.mxu0 %vm33_vm0, %v1633_v4  ;;  %1454 = vmatpush3.xpose.msk.msra.mxu1 %vm33_vm0, %v1635_v5  ;;  %p1569_p5 = scmp.ne.s32.totalorder %s1374_s17, %s1568_s18  ;;  %p1574_p7 = scmp.lt.s32.totalorder %s1568_s18, %s1568_s18 }
  0x16   :  { %1450 = vmatprep.mubr.msk.f32.mxu0 %vm1596_vm1, %v1595_v0  ;;  %1455 = vmatprep.mubr.msk.f32.mxu1 %vm1596_vm1, %v1595_v0 }
  0x17   :  { %1458 = vmatprep.subr.mxu0 %v1595_v0  ;;  %1463 = vmatprep.subr.mxu1 %v1595_v0  ;;  %v1703_v43 = vld [vmem:[#allocation2] sm:$0xff]  ;;  %p1575_p8 = por %p1574_p7, %p1573_p6 }
  0x18   :  { %1451 = vmatmul.mubr.msk.f32.vlgmr.msra.gmra.mxu0 %vm33_vm0, %v43_v3  ;;  %1456 = vmatmul.mubr.msk.f32.vlgmr.msra.gmra.mxu1 %vm33_vm0, %v43_v3 }
  0x19   :  { %1459 = vmatpush3.xpose.msk.msra.mxu0 %vm33_vm0, %v1647_v6  ;;  %1464 = vmatpush3.xpose.msk.msra.mxu1 %vm33_vm0, %v1649_v7  ;;  %p1576_p9 = pnand %p1575_p8, %p1569_p5 }
  0x1a   :  { %1460 = vmatprep.mubr.msk.f32.mxu0 %vm1596_vm1, %v1595_v0  ;;  %1465 = vmatprep.mubr.msk.f32.mxu1 %vm1596_vm1, %v1595_v0 }
  0x1b   :  { %1468 = vmatprep.subr.mxu0 %v1595_v0  ;;  %1473 = vmatprep.subr.mxu1 %v1595_v0 }
  0x1c   :  { %1461 = vmatmul.mubr.msk.f32.vlgmr.msra.gmra.mxu0 %vm33_vm0, %v43_v3  ;;  %1466 = vmatmul.mubr.msk.f32.vlgmr.msra.gmra.mxu1 %vm33_vm0, %v43_v3 }
  0x1d   :  { %1469 = vmatpush3.xpose.msk.msra.mxu0 %vm33_vm0, %v1663_v8  ;;  %1474 = vmatpush3.xpose.msk.msra.mxu1 %vm33_vm0, %v1665_v9 }
  0x1e   :  { %1470 = vmatprep.mubr.msk.f32.mxu0 %vm1596_vm1, %v1595_v0  ;;  %1475 = vmatprep.mubr.msk.f32.mxu1 %vm1596_vm1, %v1595_v0 }
  0x1f   :  { %1478 = vmatprep.subr.mxu0 %v1595_v0  ;;  %1483 = vmatprep.subr.mxu1 %v1595_v0 }
  0x20   :  { %1471 = vmatmul.mubr.msk.f32.vlgmr.msra.gmra.mxu0 %vm33_vm0, %v43_v3  ;;  %1476 = vmatmul.mubr.msk.f32.vlgmr.msra.gmra.mxu1 %vm33_vm0, %v43_v3 }
  0x21   :  { %1479 = vmatpush3.msra.mxu0 %v35_v1  ;;  %1480 = vmatprep.mubr.msk.f32.mxu0 %vm1596_vm1, %v1595_v0 }
  0x22   :  { %1484 = vmatpush3.msra.mxu1 %v36_v2  ;;  %1485 = vmatprep.mubr.msk.f32.mxu1 %vm1596_vm1, %v1595_v0 }
  0x23   :  { %1488 = vmatprep.subr.mxu0 %v1595_v0  ;;  %1493 = vmatprep.subr.mxu1 %v1595_v0 }
  0x24   :  { %1526 = vset.pattern.permute.xlu0 %v1598_v42  ;;  %1527 = vset.pattern.permute.xlu1 %v1598_v42 }
  0xd4   :  { %v1692_v11 = vpop.f32.mrf.mxu0  ;;  %v190_v12 = vpop.f32.mrf.mxu1 }
  0xd5   :  { %v641_v13 = vrot.slane %v190_v12, 7 }
  0xd6   :  { %v1442_v14 = vpop.f32.mrf.mxu0  ;;  %v1447_v15 = vpop.f32.mrf.mxu1 }
  0xd7   :  { %v643_v19 = vsel %vm642_vm3, %v641_v13, %v1692_v11 }
  0xd8   :  { %v263_v16 = vpop.f32.mrf.mxu0  ;;  %v336_v17 = vpop.f32.mrf.mxu1 }
  0xd9   :  { %v644_v18 = vrot.slane %v263_v16, 6  ;;  %v647_v20 = vrot.slane %v336_v17, 5 }
  0xda   :  { %v1452_v21 = vpop.f32.mrf.mxu0  ;;  %v1457_v22 = vpop.f32.mrf.mxu1 }
  0xdb   :  { %v646_v23 = vsel %vm645_vm4, %v644_v18, %v643_v19 }
  0xdc   :  { %v409_v24 = vpop.f32.mrf.mxu0  ;;  %v482_v25 = vpop.f32.mrf.mxu1  ;;  %v649_v27 = vsel %vm648_vm5, %v647_v20, %v646_v23 }
  0xdd   :  { %v650_v26 = vrot.slane %v409_v24, 4  ;;  %v653_v28 = vrot.slane %v482_v25, 3 }
  0xde   :  { %v1462_v29 = vpop.f32.mrf.mxu0  ;;  %v1467_v30 = vpop.f32.mrf.mxu1 }
  0xdf   :  { %v652_v31 = vsel %vm651_vm6, %v650_v26, %v649_v27 }
  0xe0   :  { %v555_v32 = vpop.f32.mrf.mxu0  ;;  %v628_v33 = vpop.f32.mrf.mxu1  ;;  %v655_v38 = vsel %vm654_vm7, %v653_v28, %v652_v31 }
  0xe1   :  { %v656_v34 = vrot.slane %v555_v32, 2  ;;  %v659_v35 = vrot.slane %v628_v33, 1 }
  0xe2   :  { %v1472_v36 = vpop.f32.mrf.mxu0  ;;  %v1477_v37 = vpop.f32.mrf.mxu1 }
  0xe3   :  { %v658_v39 = vsel %vm657_vm8, %v656_v34, %v655_v38  ;;  %v714_v34 = vld [vmem:[#allocation3] sm:$0xff] }
  0xe4   :  { %v661_v40 = vsel %vm660_vm9, %v659_v35, %v658_v39 }
  0xe5   :  { %v664_v41 = vsel %vm663_vm10, %v661_v40, -inf }
  0xe6   :  { %665 = vmax.xlane.f32.xlu0 %v664_v41 }
 0x16f   :  { %v666_v44 = vpop.xlane.xlu0 %665 }
 0x170   :  { %v1706_v45 = vmax.f32 %v1703_v43, %v666_v44 }
 0x172   :  { %v668_v46 = vsub.f32 %v1703_v43, %v1706_v45  ;;  %1353 = vst.msk [vmem:[#allocation2] sm:$0xff] %vm30_vm2, %v1706_v45  ;;  %673 = vperm.xlu0 %1526, %v1706_v45  }
 0x1ed   :  { %v674_v47 = vpop.permute.xlu0 %673 }
 0x1ee   :  { %v675_v48 = vrot.slane %v674_v47, 1  ;;  %v676_v49 = vrot.slane %v674_v47, 2  ;;  %v677_v50 = vrot.slane %v674_v47, 3  ;;  %v678_v51 = vrot.slane %v674_v47, 4 }
 0x1ef   :  { %v679_v52 = vrot.slane %v674_v47, 5  ;;  %v680_v53 = vrot.slane %v674_v47, 6  ;;  %v681_v54 = vrot.slane %v674_v47, 7  ;;  %v690_v55 = vsub.f32 %v1692_v11, %v674_v47 }
 0x1f0   :  { %v691_v56 = vsub.f32 %v190_v12, %v675_v48  ;;  %v692_v57 = vsub.f32 %v263_v16, %v676_v49  ;;  %v693_v58 = vsub.f32 %v336_v17, %v677_v50  ;;  %v694_v59 = vsub.f32 %v409_v24, %v678_v51 }
 0x1f1   :  { %v695_v60 = vsub.f32 %v482_v25, %v679_v52  ;;  %v696_v61 = vsub.f32 %v555_v32, %v680_v53  ;;  %v698_v62 = vmul.f32 1.442695, %v690_v55  ;;  %v697_v63 = vsub.f32 %v628_v33, %v681_v54 }
 0x1f2   :  { %v700_v1 = vmul.f32 1.442695, %v691_v56  ;;  %v702_v2 = vmul.f32 1.442695, %v692_v57  ;;  %v704_v3 = vmul.f32 1.442695, %v693_v58 }
 0x1f3   :  { %1528 = vpow2.f32 %v698_v62  ;;  %v706_v10 = vmul.f32 1.442695, %v694_v59  ;;  %v708_v13 = vmul.f32 1.442695, %v695_v60  ;;  %v710_v14 = vmul.f32 1.442695, %v696_v61 }
 0x1f4   :  { %1530 = vpow2.f32 %v700_v1  ;;  %v712_v15 = vmul.f32 1.442695, %v697_v63  ;;  %v669_v32 = vmul.f32 1.442695, %v668_v46  ;;  %v745_v59 = vld [vmem:[#allocation4] sm:$0xff] }
 0x1f5   :  { %1532 = vpow2.f32 %v702_v2 }
 0x1f6   :  { %1534 = vpow2.f32 %v704_v3 }
 0x1f7   :  { %1536 = vpow2.f32 %v706_v10 }
 0x1f8   :  { %1538 = vpow2.f32 %v708_v13 }
 0x1f9   :  { %1540 = vpow2.f32 %v710_v14 }
 0x1fa   :  { %1542 = vpow2.f32 %v712_v15 }
 0x1fb   :  { %1544 = vpow2.f32 %v669_v32 }
 0x200   :  { %v1529_v11 = vpop.eup %1528 }
 0x201   :  { %v1531_v12 = vpop.eup %1530  ;;  %1481 = vmatmul.mubr.msk.f32.vlgmr.msra.gmra.mxu0 %vm663_vm10, %v1529_v11 }
 0x202   :  { %v1533_v16 = vpop.eup %1532  ;;  %1486 = vmatmul.mubr.msk.f32.vlgmr.msra.gmra.mxu1 %vm663_vm10, %v1531_v12  ;;  %1489 = vmatpush3.msra.mxu0 %v1633_v4  ;;  %v724_v17 = vrot.slane %v1531_v12, 7 }
 0x203   :  { %v1535_v18 = vpop.eup %1534  ;;  %1490 = vmatprep.mubr.msk.f32.mxu0 %vm1596_vm1, %v1595_v0  ;;  %1494 = vmatpush3.msra.mxu1 %v1635_v5  ;;  %v726_v19 = vrot.slane %v1533_v16, 6 }
 0x204   :  { %v1537_v20 = vpop.eup %1536  ;;  %1495 = vmatprep.mubr.msk.f32.mxu1 %vm1596_vm1, %v1595_v0  ;;  %1498 = vmatprep.subr.mxu0 %v1595_v0  ;;  %v725_v21 = vsel %vm642_vm3, %v724_v17, %v1529_v11  ;;  %v728_v22 = vrot.slane %v1535_v18, 5 }
 0x205   :  { %v1539_v23 = vpop.eup %1538  ;;  %1491 = vmatmul.mubr.msk.f32.vlgmr.msra.gmra.mxu0 %vm663_vm10, %v1533_v16  ;;  %1503 = vmatprep.subr.mxu1 %v1595_v0  ;;  %v727_v4 = vsel %vm645_vm4, %v726_v19, %v725_v21  ;;  %v730_v24 = vrot.slane %v1537_v20, 4 }
 0x206   :  { %v1541_v25 = vpop.eup %1540  ;;  %1496 = vmatmul.mubr.msk.f32.vlgmr.msra.gmra.mxu1 %vm663_vm10, %v1535_v18  ;;  %1499 = vmatpush3.msra.mxu0 %v1647_v6  ;;  %v729_v5 = vsel %vm648_vm5, %v728_v22, %v727_v4  ;;  %v732_v26 = vrot.slane %v1539_v23, 3 }
 0x207   :  { %v1543_v27 = vpop.eup %1542  ;;  %1500 = vmatprep.mubr.msk.f32.mxu0 %vm1596_vm1, %v1595_v0  ;;  %1504 = vmatpush3.msra.mxu1 %v1649_v7  ;;  %v731_v28 = vsel %vm651_vm6, %v730_v24, %v729_v5  ;;  %v734_v29 = vrot.slane %v1541_v25, 2 }
 0x208   :  { %1505 = vmatprep.mubr.msk.f32.mxu1 %vm1596_vm1, %v1595_v0  ;;  %1508 = vmatprep.subr.mxu0 %v1595_v0  ;;  %v733_v30 = vsel %vm654_vm7, %v732_v26, %v731_v28  ;;  %v736_v6 = vrot.slane %v1543_v27, 1 }
 0x209   :  { %1501 = vmatmul.mubr.msk.f32.vlgmr.msra.gmra.mxu0 %vm663_vm10, %v1537_v20  ;;  %1513 = vmatprep.subr.mxu1 %v1595_v0  ;;  %v735_v31 = vsel %vm657_vm8, %v734_v29, %v733_v30 }
 0x20a   :  { %1506 = vmatmul.mubr.msk.f32.vlgmr.msra.gmra.mxu1 %vm663_vm10, %v1539_v23  ;;  %1509 = vmatpush3.msra.mxu0 %v1663_v8  ;;  %v737_v7 = vsel %vm660_vm9, %v736_v6, %v735_v31  ;;  %v1545_v8 = vpop.eup %1544 }
 0x20b   :  { %1510 = vmatprep.mubr.msk.f32.mxu0 %vm1596_vm1, %v1595_v0  ;;  %v739_v33 = vsel %vm663_vm10, %v737_v7, 0.0  ;;  %1514 = vmatpush3.msra.mxu1 %v1665_v9  ;;  %v715_v35 = vmul.f32 %v1545_v8, %v714_v34 }
 0x20c   :  { %740 = vadd.xlane.f32.xlu1 %v739_v33  ;;  %1515 = vmatprep.mubr.msk.f32.mxu1 %vm1596_vm1, %v1595_v0 }
 0x20d   :  { %1511 = vmatmul.mubr.msk.f32.vlgmr.msra.gmra.mxu0 %vm663_vm10, %v1541_v25 }
 0x20e   :  { %1516 = vmatmul.mubr.msk.f32.vlgmr.msra.gmra.mxu1 %vm663_vm10, %v1543_v27 }
 0x21d   :  { %748 = vperm.xlu1 %1527, %v1545_v8  }
 0x295   :  { %v741_v36 = vpop.xlane.xlu1 %740 }
 0x296   :  { %v742_v37 = vadd.f32 %v741_v36, %v715_v35 }
 0x298   :  { %744 = vst.msk [vmem:[#allocation3] sm:$0xff] %vm30_vm2, %v742_v37 }
 0x299   :  { %v749_v60 = vpop.permute.xlu1 %748 }
 0x29a   :  { %v751_v10 = vmul.f32 %v749_v60, %v745_v59 }
 0x29f   :  { %v1358_v38 = vld [vmem:[#allocation3] sm:$0xff] }
 0x2a0   :  { %1546 = vrcp.f32 %v1358_v38 }
 0x2ad   :  { %v1547_v9 = vpop.eup %1546 }
 0x2ae   :  { %1362 = vperm.xlu1 %1527, %v1547_v9  }
 0x2c1   :  { %v820_v39 = vpop.f32.mrf.mxu0 }
 0x2c2   :  { %v892_v40 = vpop.f32.mrf.mxu1 }
 0x2c3   :  { %v1482_v0 = vpop.f32.mrf.mxu0  ;;  %v1336_v41 = vrot.slane %v892_v40, 7 }
 0x2c4   :  { %v1487_v42 = vpop.f32.mrf.mxu1 }
 0x2c5   :  { %v1337_v43 = vsel %vm642_vm3, %v1336_v41, %v820_v39  ;;  %v964_v44 = vpop.f32.mrf.mxu0 }
 0x2c6   :  { %v1338_v45 = vrot.slane %v964_v44, 6  ;;  %v1036_v46 = vpop.f32.mrf.mxu1 }
 0x2c7   :  { %v1492_v47 = vpop.f32.mrf.mxu0  ;;  %v1340_v48 = vrot.slane %v1036_v46, 5 }
 0x2c8   :  { %v1339_v49 = vsel %vm645_vm4, %v1338_v45, %v1337_v43  ;;  %v1497_v50 = vpop.f32.mrf.mxu1 }
 0x2c9   :  { %v1341_v51 = vsel %vm648_vm5, %v1340_v48, %v1339_v49  ;;  %v1108_v52 = vpop.f32.mrf.mxu0 }
 0x2ca   :  { %v1342_v53 = vrot.slane %v1108_v52, 4  ;;  %v1180_v54 = vpop.f32.mrf.mxu1 }
 0x2cb   :  { %v1502_v55 = vpop.f32.mrf.mxu0  ;;  %v1344_v56 = vrot.slane %v1180_v54, 3 }
 0x2cc   :  { %v1343_v57 = vsel %vm651_vm6, %v1342_v53, %v1341_v51  ;;  %v1507_v58 = vpop.f32.mrf.mxu1 }
 0x2cd   :  { %v1345_v61 = vsel %vm654_vm7, %v1344_v56, %v1343_v57  ;;  %v1252_v62 = vpop.f32.mrf.mxu0 }
 0x2ce   :  { %v1346_v63 = vrot.slane %v1252_v62, 2  ;;  %v1324_v1 = vpop.f32.mrf.mxu1 }
 0x2cf   :  { %v1512_v2 = vpop.f32.mrf.mxu0  ;;  %v1348_v3 = vrot.slane %v1324_v1, 1 }
 0x2d0   :  { %v1347_v13 = vsel %vm657_vm8, %v1346_v63, %v1345_v61  ;;  %v1517_v14 = vpop.f32.mrf.mxu1 }
 0x2d1   :  { %v1349_v15 = vsel %vm660_vm9, %v1348_v3, %v1347_v13 }
 0x2d2   :  { %v1351_v11 = vadd.f32 %v1349_v15, %v751_v10 }
 0x2d4   :  { %1352 = vst.msk [vmem:[#allocation4] sm:$0xff] %vm33_vm0, %v1351_v11 }
 0x2db   :  { %v1357_v12 = vld [vmem:[#allocation4] sm:$0xff] }
 0x329   :  { %v1363_v16 = vpop.permute.xlu1 %1362 }
 0x32a   :  { %v1365_v17 = vmul.f32 %v1363_v16, %v1357_v12 }
 0x32c   :  { %1366 = vst.msk [vmem:[#allocation8] sm:$0xff] %vm33_vm0, %v1365_v17 }
 0x32d   :  { %1579 = shalt.err (!%p1576_p9)
}
 0x32e   :  { %1376 = dma.vmem_to_hbm [thread:$0]  %s1374_s17, 128, %s1770_s2, [#allocation7]  }
 0x32f   :  { %1590 = dma.done.wait [#allocation7], 128  }
 0x330   :  { %1591 = vsyncadd [#allocation7], 4294967168 }
 0x331   :  { %1380 = vsyncpa [#allocation6], 1 }
 0x332   :  { %1381 = vsyncpa [#allocation7], 1 }

</bundles_post_ra>
